<compile_context>
chip_gen: v6e
topology: v6e:2x2x1
jax: 0.10.0
libtpu: 0.0.40
codegen_flags: <defaults>
</compile_context>

<pallas_src>
import functools

import numpy as np

import jax
import jax.numpy as jnp
from jax.experimental import pallas as pl
from jax.experimental.pallas import tpu as pltpu


# ----------------------------------------------------------------------------
# Pallas kernel: fused 1x1-conv (row-tiled matmul) + squared-error partial sum
# ----------------------------------------------------------------------------
def _ft_mse_kernel(s_ref, w_ref, b_ref, t_ref, part_ref, *,
                   tm, m_total, n_inner, needs_mask, pg):
    """One grid step == one (outer, inner) row tile of one transform layer.

    s_ref   : (tm, Cs)     student rows (bf16 or f32)
    w_ref   : (Cs, Ct)     conv1x1 weight, pre-transposed (bf16 or f32)
    b_ref   : (1,  Ct)     conv1x1 bias (f32)
    t_ref   : (tm, Ct)     teacher rows (bf16 or f32)
    part_ref: (1, pg, Ct)  f32 partial SSE, resident across the inner axis
    """
    mi = pl.program_id(1)

    @pl.when(mi == 0)
    def _init():
        part_ref[...] = jnp.zeros_like(part_ref)

    # MXU matmul with f32 accumulation; everything after the dot stays f32.
    y = jnp.dot(s_ref[...], w_ref[...], preferred_element_type=jnp.float32)
    d = (y + b_ref[...].astype(jnp.float32)) - t_ref[...].astype(jnp.float32)
    sq = d * d                                             # (tm, Ct) f32

    if needs_mask:
        # Last row tile may extend past M: zero the out-of-range rows.
        blk = pl.program_id(0) * n_inner + mi
        rows = blk * tm + jax.lax.broadcasted_iota(jnp.int32, sq.shape, 0)
        sq = jnp.where(rows < m_total, sq, 0.0)

    ct = sq.shape[-1]
    # Row-group reduction only (pure-VPU vreg adds); the tiny cross-lane /
    # cross-block reduction is deferred to the wrapper.
    part_ref[0] += jnp.sum(sq.reshape(tm // pg, pg, ct), axis=0)


def _choose_tm(m, cs, ct, itemsize, max_tm=2048,
               vmem_budget=16 * 1024 * 1024):
    """Row-tile size: largest tile whose double-buffered input blocks plus the
    f32 kernel temporaries (y, d, sq) fit a conservative budget sized for the
    v7x 64 MiB VMEM (v5e/v6e have more headroom)."""
    per_row = 2 * (cs + ct) * itemsize + 3 * ct * 4
    tm = min(vmem_budget // max(per_row, 1), max_tm)
    if tm >= m:
        return m                         # single full-extent block (always legal)
    return max(8, (tm // 8) * 8)         # tiled along rows -> multiple of 8


def _layer_mse(s_feat, t_feat, w_oi, bias, *, feature_dtype=jnp.bfloat16,
               max_tm=2048):
    """mean((conv1x1(s_feat) - t_feat) ** 2) for one layer via one pallas_call.

    s_feat: [..., Cs] student feature (channel-last), flattened to (M, Cs).
    t_feat: [..., Ct] teacher feature (channel-last).  MSE is layout-invariant,
            so this matches the PyTorch NCHW element-wise comparison exactly.
    w_oi:   [Ct, Cs] conv1x1 weight (PyTorch layout);  bias: [Ct].
    """
    cs = s_feat.shape[-1]
    ct = t_feat.shape[-1]
    s2d = s_feat.reshape(-1, cs).astype(feature_dtype)       # (M, Cs)
    t2d = t_feat.reshape(-1, ct).astype(feature_dtype)       # (M, Ct)
    m = s2d.shape[0]
    w_io = jnp.transpose(w_oi, (1, 0)).astype(feature_dtype)  # (Cs, Ct)
    b2d = bias.reshape(1, ct).astype(jnp.float32)

    itemsize = np.dtype(feature_dtype).itemsize
    tm = _choose_tm(m, cs, ct, itemsize, max_tm=max_tm)
    blocks = (m + tm - 1) // tm
    if blocks % 2 == 0:                      # two balanced outer blocks keep
        n_outer, inner = 2, blocks // 2      # both v7x TensorCores busy
    else:
        n_outer, inner = 1, blocks
    needs_mask = (blocks * tm != m)          # ragged last row tile
    pg = 8 if tm % 8 == 0 else 1             # sublane rows kept in the partial

    kernel = functools.partial(
        _ft_mse_kernel, tm=tm, m_total=m, n_inner=inner,
        needs_mask=needs_mask, pg=pg)

    partials = pl.pallas_call(
        kernel,
        out_shape=jax.ShapeDtypeStruct((n_outer, pg, ct), jnp.float32),
        grid=(n_outer, inner),
        in_specs=[
            pl.BlockSpec((tm, cs), lambda o, mi: (o * inner + mi, 0)),
            pl.BlockSpec((cs, ct), lambda o, mi: (0, 0)),
            pl.BlockSpec((1, ct), lambda o, mi: (0, 0)),
            pl.BlockSpec((tm, ct), lambda o, mi: (o * inner + mi, 0)),
        ],
        out_specs=pl.BlockSpec((1, pg, ct), lambda o, mi: (o, 0, 0)),
        compiler_params=pltpu.CompilerParams(
            # outer row blocks are independent; inner axis carries the
            # accumulating partial -> ("parallel", "arbitrary").
            dimension_semantics=("parallel", "arbitrary"),
            vmem_limit_bytes=48 * 1024 * 1024,
        ),
    )(s2d, w_io, b2d, t2d)

    # Tiny (n_outer, pg, Ct) reduction + the mean's denominator in the wrapper.
    return jnp.sum(partials) / jnp.float32(m * ct)


def fused_feature_transform_mse(s_feats, t_feats, transforms,
                                feature_dtype=jnp.bfloat16):
    """sum_i F.mse_loss(conv1x1_i(s_feat_i), t_feat_i)."""
    total = jnp.float32(0.0)
    for (w, b), s, t in zip(transforms, s_feats, t_feats):
        total = total + _layer_mse(s, t, w, b, feature_dtype=feature_dtype)
    return total


# ----------------------------------------------------------------------------
# Synthetic (deterministic) teacher / student models + DistillationModel glue
# ----------------------------------------------------------------------------
def make_params(key, c_in=4, c_s=32, c_t=48, num_classes=10):
    ks = jax.random.split(key, 10)
    scale = 0.1
    params = {
        # student: two NHWC channel projections + classification head
        "Ws1": scale * jax.random.normal(ks[0], (c_in, c_s), jnp.float32),
        "Ws2": scale * jax.random.normal(ks[1], (c_s, c_s), jnp.float32),
        "W_head": scale * jax.random.normal(ks[2], (c_s, num_classes), jnp.float32),
        "b_head": jnp.zeros((num_classes,), jnp.float32),
        # teacher: two channel projections
        "Wt1": scale * jax.random.normal(ks[3], (c_in, c_t), jnp.float32),
        "Wt2": scale * jax.random.normal(ks[4], (c_in, c_t), jnp.float32),
    }
    # FeatureTransform conv1x1 params, PyTorch-default-style uniform(-k, k),
    # k = 1/sqrt(fan_in), fan_in = C_s (kernel_size=1).  In the PyTorch module
    # the transforms are built lazily on the first forward; here they are
    # created eagerly from the (static) feature channel widths.
    k = 1.0 / jnp.sqrt(jnp.float32(c_s))
    transforms = []
    for i in range(2):
        wkey, bkey = jax.random.split(ks[5 + i])
        w = jax.random.uniform(wkey, (c_t, c_s), jnp.float32, -k, k)
        b = jax.random.uniform(bkey, (c_t,), jnp.float32, -k, k)
        transforms.append((w, b))
    params["transforms"] = transforms
    return params


def student_model(params, x_nchw):
    # Input is NCHW (PyTorch convention); features are NHWC (ViT-style
    # channel-last), matching `in_channels = s_feat.shape[-1]` in the module.
    x_nhwc = jnp.transpose(x_nchw, (0, 2, 3, 1))
    s1 = jnp.tanh(x_nhwc @ params["Ws1"])                 # [B, H, W, C_s]
    s2 = jnp.tanh(s1 @ params["Ws2"])                     # [B, H, W, C_s]
    s_last = jnp.mean(s2, axis=(1, 2))                    # [B, C_s] (cls-like)
    out = s_last @ params["W_head"] + params["b_head"]    # [B, num_classes]
    return out, [s1, s2, s_last]


def teacher_model(params, x_nchw):
    # Teacher features are emitted channel-last (NHWC) so the kernel needs no
    # extra HBM transpose pass; F.mse_loss is layout-invariant so this matches
    # the PyTorch NCHW element-wise comparison exactly.
    x_nhwc = jnp.transpose(x_nchw, (0, 2, 3, 1))
    t1 = jnp.tanh(x_nhwc @ params["Wt1"])                 # [B, H, W, C_t]
    t2 = jnp.tanh(x_nhwc @ params["Wt2"])                 # [B, H, W, C_t]
    t_out = jnp.mean(t1, axis=(1, 2))                     # unused by forward
    return t_out, [t1, t2]


def distillation_forward(params, x_nchw):
    # teacher runs "with torch.no_grad()" -> stop_gradient
    _, teacher_features = teacher_model(params, x_nchw)
    teacher_features = [jax.lax.stop_gradient(t) for t in teacher_features]
    student_output, student_features = student_model(params, x_nchw)

    distillation_loss = fused_feature_transform_mse(
        student_features[:-1], teacher_features, params["transforms"])
    return student_output, distillation_loss


# ----------------------------------------------------------------------------
if __name__ == "__main__":
    key = jax.random.PRNGKey(0)
    pkey, xkey, skey, tkey = jax.random.split(key, 4)

    # Small shapes consistent with the module: NCHW input [B=2, C=4, H=W=16]
    params = make_params(pkey, c_in=4, c_s=32, c_t=48, num_classes=10)
    x = jax.random.normal(xkey, (2, 4, 16, 16), jnp.float32)

    student_out, loss = jax.jit(distillation_forward)(params, x)
    jax.block_until_ready((student_out, loss))

    # sanity check 1: full forward vs a pure-JAX f32 reference (kernel streams
    # the features in bf16 -> relaxed tolerance).
    def ref_loss(params, x):
        _, t_feats = teacher_model(params, x)
        _, s_feats = student_model(params, x)
        total = 0.0
        for (w, b), s, t in zip(params["transforms"], s_feats[:-1], t_feats):
            y = jnp.einsum("bhwc,oc->bhwo", s, w) + b
            total = total + jnp.mean((y - t) ** 2)
        return total

    ref = jax.jit(ref_loss)(params, x)
    assert jnp.allclose(loss, ref, rtol=5e-2, atol=1e-3), (loss, ref)
    assert student_out.shape == (2, 10)

    # sanity check 2: exercise the tiled / accumulating / ragged-mask path
    # (forced-small row tile, M not a multiple of the tile) in f32, tight tol.
    s_t = jax.random.normal(skey, (1, 7, 19, 32), jnp.float32)
    t_t = jax.random.normal(tkey, (1, 7, 19, 48), jnp.float32)
    w_t, b_t = params["transforms"][0]
    tiled = jax.jit(functools.partial(_layer_mse, feature_dtype=jnp.float32,
                                      max_tm=40))(s_t, t_t, w_t, b_t)
    y_t = jnp.einsum("bhwc,oc->bhwo", s_t, w_t) + b_t
    ref_t = jnp.mean((y_t - t_t) ** 2)
    jax.block_until_ready(tiled)
    assert jnp.allclose(tiled, ref_t, rtol=1e-5, atol=1e-6), (tiled, ref_t)

    print("KERNEL_OK")
</pallas_src>

<mosaic_0001>
module attributes {stable_mosaic.version = 11 : i64} {
  func.func @_ft_mse_kernel(%arg0: i32, %arg1: i32, %arg2: memref<512x32xbf16, #tpu.memory_space<vmem>>, %arg3: memref<32x48xbf16, #tpu.memory_space<vmem>>, %arg4: memref<1x48xf32, #tpu.memory_space<vmem>>, %arg5: memref<512x48xbf16, #tpu.memory_space<vmem>>, %arg6: memref<1x8x48xf32, #tpu.memory_space<vmem>>) attributes {dimension_semantics = [#tpu.dimension_semantics<parallel>, #tpu.dimension_semantics<arbitrary>], iteration_bounds = array<i64: 1, 1>, scalar_prefetch = 0 : i64, scratch_operands = 0 : i64, tpu.core_type = #tpu.core_type<tc>, window_params = [{transform_indices = @transform_0, window_bounds = array<i64: 512, 32>}, {pipeline_mode = #tpu.pipeline_mode<synchronous>, transform_indices = @transform_1, window_bounds = array<i64: 32, 48>}, {pipeline_mode = #tpu.pipeline_mode<synchronous>, transform_indices = @transform_2, window_bounds = array<i64: 1, 48>}, {transform_indices = @transform_3, window_bounds = array<i64: 512, 48>}, {transform_indices = @transform_4, window_bounds = array<i64: 1, 8, 48>}]} {
    %c0_i32 = arith.constant 0 : i32
    %0 = arith.cmpi eq, %arg1, %c0_i32 : i32
    %1 = arith.extui %0 : i1 to i32
    %c0_i32_0 = arith.constant 0 : i32
    %2 = arith.cmpi ne, %1, %c0_i32_0 : i32
    scf.if %2 {
      %cst_15 = arith.constant 0.000000e+00 : f32
      %21 = vector.broadcast %cst_15 : f32 to vector<1x8x48xf32>
      %c0_16 = arith.constant 0 : index
      %c0_17 = arith.constant 0 : index
      %c0_18 = arith.constant 0 : index
      %22 = vector.load %arg6[%c0_16, %c0_17, %c0_18] : memref<1x8x48xf32, #tpu.memory_space<vmem>>, vector<1x8x48xf32>
      tpu.vector_store %arg6[%c0_16, %c0_17, %c0_18], %21 {strides = array<i32>} : memref<1x8x48xf32, #tpu.memory_space<vmem>>, vector<1x8x48xf32>,
    } else {
    }
    %c0 = arith.constant 0 : index
    %c0_1 = arith.constant 0 : index
    %3 = vector.load %arg2[%c0, %c0_1] : memref<512x32xbf16, #tpu.memory_space<vmem>>, vector<512x32xbf16>
    %c0_2 = arith.constant 0 : index
    %c0_3 = arith.constant 0 : index
    %4 = vector.load %arg3[%c0_2, %c0_3] : memref<32x48xbf16, #tpu.memory_space<vmem>>, vector<32x48xbf16>
    %cst = arith.constant dense<0.000000e+00> : vector<512x48xf32>
    %5 = tpu.matmul %3, %4, %cst {dimension_numbers = #tpu.dot_dimension_numbers<[1], [0], [0], [1], [0, 0, 1, 1], [], []>} : vector<512x32xbf16>, vector<32x48xbf16>, vector<512x48xf32> -> vector<512x48xf32>
    %c0_4 = arith.constant 0 : index
    %c0_5 = arith.constant 0 : index
    %6 = vector.load %arg4[%c0_4, %c0_5] : memref<1x48xf32, #tpu.memory_space<vmem>>, vector<1x48xf32>
    %7 = vector.broadcast %6 : vector<1x48xf32> to vector<512x48xf32>
    %8 = arith.addf %5, %7 : vector<512x48xf32>
    %c0_6 = arith.constant 0 : index
    %c0_7 = arith.constant 0 : index
    %9 = vector.load %arg5[%c0_6, %c0_7] : memref<512x48xbf16, #tpu.memory_space<vmem>>, vector<512x48xbf16>
    %10 = arith.extf %9 : vector<512x48xbf16> to vector<512x48xf32>
    %11 = arith.subf %8, %10 : vector<512x48xf32>
    %12 = arith.mulf %11, %11 : vector<512x48xf32>
    %c0_8 = arith.constant 0 : index
    %c0_9 = arith.constant 0 : index
    %c0_10 = arith.constant 0 : index
    %13 = vector.load %arg6[%c0_8, %c0_9, %c0_10] : memref<1x8x48xf32, #tpu.memory_space<vmem>>, vector<1x8x48xf32>
    %14 = vector.shape_cast %13 : vector<1x8x48xf32> to vector<8x48xf32>
    %15 = vector.shape_cast %12 : vector<512x48xf32> to vector<64x8x48xf32>
    %cst_11 = arith.constant dense<0.000000e+00> : vector<8x48xf32>
    %16 = vector.multi_reduction <add>, %15, %cst_11 [0] : vector<64x8x48xf32> to vector<8x48xf32>
    %17 = arith.addf %14, %16 : vector<8x48xf32>
    %c0_12 = arith.constant 0 : index
    %c0_13 = arith.constant 0 : index
    %c0_14 = arith.constant 0 : index
    %18 = vector.load %arg6[%c0_12, %c0_13, %c0_14] : memref<1x8x48xf32, #tpu.memory_space<vmem>>, vector<1x8x48xf32>
    %19 = vector.shape_cast %18 : vector<1x8x48xf32> to vector<8x48xf32>
    %20 = vector.shape_cast %17 : vector<8x48xf32> to vector<1x8x48xf32>
    tpu.vector_store %arg6[%c0_12, %c0_13, %c0_14], %20 {strides = array<i32>} : memref<1x8x48xf32, #tpu.memory_space<vmem>>, vector<1x8x48xf32>,
    return
  }
  func.func @transform_0(%arg0: i32, %arg1: i32) -> (i32, i32) {
    %c1_i32 = arith.constant 1 : i32
    %0 = arith.muli %arg0, %c1_i32 : i32
    %1 = arith.addi %0, %arg1 : i32
    %c0_i32 = arith.constant 0 : i32
    %c0_i32_0 = arith.constant 0 : i32
    return %1, %c0_i32 : i32, i32
  }
  func.func @transform_1(%arg0: i32, %arg1: i32) -> (i32, i32) {
    %c0_i32 = arith.constant 0 : i32
    %c0_i32_0 = arith.constant 0 : i32
    %c0_i32_1 = arith.constant 0 : i32
    return %c0_i32, %c0_i32_0 : i32, i32
  }
  func.func @transform_2(%arg0: i32, %arg1: i32) -> (i32, i32) {
    %c0_i32 = arith.constant 0 : i32
    %c0_i32_0 = arith.constant 0 : i32
    %c0_i32_1 = arith.constant 0 : i32
    return %c0_i32, %c0_i32_0 : i32, i32
  }
  func.func @transform_3(%arg0: i32, %arg1: i32) -> (i32, i32) {
    %c1_i32 = arith.constant 1 : i32
    %0 = arith.muli %arg0, %c1_i32 : i32
    %1 = arith.addi %0, %arg1 : i32
    %c0_i32 = arith.constant 0 : i32
    %c0_i32_0 = arith.constant 0 : i32
    return %1, %c0_i32 : i32, i32
  }
  func.func @transform_4(%arg0: i32, %arg1: i32) -> (i32, i32, i32) {
    %c0_i32 = arith.constant 0 : i32
    %c0_i32_0 = arith.constant 0 : i32
    %c0_i32_1 = arith.constant 0 : i32
    return %arg0, %c0_i32, %c0_i32_0 : i32, i32, i32
  }
}

</mosaic_0001>

<bundles_post_ra>
// kernel: distillation_forward.2
= control target key start
LH: loop header
LB: loop body
LE: loop exit
PB: predicated region body
PF: predicated region fallthrough
CT: control target
= control target key end

     0   :  { %vm315_vm0 = vcmask 261120   ;;  %vm66_vm1 = vcmask 392192   ;;  %v1471_v44 = vmov 0.0   ;;  %s1949_s1 = inlined_call_operand.vmem [shape: bf16[32,48], index: 1, kind: input, shape index: {}]   ;;  %s1950_s0 = inlined_call_operand.vmem [shape: bf16[512,32], index: 0, kind: input, shape index: {}]   ;;  %s1951_s2 = inlined_call_operand.vmem [shape: f32[1,48], index: 2, kind: input, shape index: {}]   ;;  %s1952_s3 = inlined_call_operand.vmem [shape: bf16[512,48], index: 3, kind: input, shape index: {}]   ;;  %s1953_s4 = inlined_call_operand.vmem [shape: f32[1,8,48], index: 4, kind: output, shape index: {}]  }
   0x1   :  { %v1437_v0 = vld [vmem:[%s1949_s1 + $0x8] sm:$0xff]   ;;  %v1438_v1 = vld [vmem:[%s1949_s1] sm:$0xff]   ;;  %v1441_v4 = vld [vmem:[%s1950_s0 + $0x10] sm:$0xff]   ;;  %67 = vst.msk [vmem:[%s1953_s4] sm:$0xff] %vm66_vm1, %v1471_v44 }
   0x2   :  { %1364 = vmatprep.subr.bf16.mxu0 %v1437_v0  ;;  %v1439_v2 = vld [vmem:[%s1950_s0] sm:$0xff]   ;;  %1432 = vmatprep.subr.bf16.mxu1 %v1437_v0  ;;  %v1440_v3 = vld [vmem:[%s1950_s0 + $0x8] sm:$0xff]   ;;  %v1442_v5 = vld [vmem:[%s1950_s0 + $0x18] sm:$0xff]  }
   0x3   :  { %1365 = vmatpush3.bf16.msra.mxu0 %v1437_v0  ;;  %1434 = vmatpush3.bf16.msra.mxu1 %v1437_v0  ;;  %v1443_v6 = vld [vmem:[%s1950_s0 + $0x20] sm:$0xff]   ;;  %v1456_v8 = vld [vmem:[%s1950_s0 + $0x88] sm:$0xff]   ;;  %v1457_v9 = vld [vmem:[%s1950_s0 + $0x90] sm:$0xff]  }
   0x4   :  { %1366 = vmatprep.subr.bf16.mxu0 %v1438_v1  ;;  %1368 = vmatprep.mubr.msk.bf16.mxu0 %vm315_vm0, %v1439_v2  ;;  %v1455_v7 = vld [vmem:[%s1950_s0 + $0x80] sm:$0xff]   ;;  %v1444_v10 = vld [vmem:[%s1950_s0 + $0x28] sm:$0xff]   ;;  %v1445_v11 = vld [vmem:[%s1950_s0 + $0x30] sm:$0xff]  }
   0x5   :  { %1433 = vmatprep.subr.bf16.mxu1 %v1438_v1  ;;  %1400 = vmatprep.mubr.msk.bf16.mxu1 %vm315_vm0, %v1455_v7  ;;  %v1458_v12 = vld [vmem:[%s1950_s0 + $0x98] sm:$0xff]   ;;  %v1459_v13 = vld [vmem:[%s1950_s0 + $0xa0] sm:$0xff]   ;;  %v1460_v16 = vld [vmem:[%s1950_s0 + $0xa8] sm:$0xff]  }
   0x6   :  { %v1446_v14 = vld [vmem:[%s1950_s0 + $0x38] sm:$0xff]   ;;  %v1447_v15 = vld [vmem:[%s1950_s0 + $0x40] sm:$0xff]   ;;  %v1461_v17 = vld [vmem:[%s1950_s0 + $0xb0] sm:$0xff]  }
   0x7   :  { %1367 = vmatpush3.bf16.msra.mxu0 %v1438_v1  ;;  %1435 = vmatpush3.bf16.msra.mxu1 %v1438_v1  ;;  %v1448_v18 = vld [vmem:[%s1950_s0 + $0x48] sm:$0xff]   ;;  %v1449_v19 = vld [vmem:[%s1950_s0 + $0x50] sm:$0xff]   ;;  %v1462_v20 = vld [vmem:[%s1950_s0 + $0xb8] sm:$0xff]  }
   0x8   :  { %v1463_v21 = vld [vmem:[%s1950_s0 + $0xc0] sm:$0xff]   ;;  %v1450_v22 = vld [vmem:[%s1950_s0 + $0x58] sm:$0xff]   ;;  %v1464_v24 = vld [vmem:[%s1950_s0 + $0xc8] sm:$0xff]  }
   0x9   :  { %v1451_v23 = vld [vmem:[%s1950_s0 + $0x60] sm:$0xff]   ;;  %v1465_v25 = vld [vmem:[%s1950_s0 + $0xd0] sm:$0xff]   ;;  %v1452_v26 = vld [vmem:[%s1950_s0 + $0x68] sm:$0xff]  }
   0xa   :  { %1369 = vmatmul.mubr.msk.bf16.vlgmr.msra.gmra.mxu0 %vm315_vm0, %v1440_v3  ;;  %1401 = vmatmul.mubr.msk.bf16.vlgmr.msra.gmra.mxu1 %vm315_vm0, %v1456_v8  ;;  %v1453_v27 = vld [vmem:[%s1950_s0 + $0x70] sm:$0xff]   ;;  %v1466_v28 = vld [vmem:[%s1950_s0 + $0xd8] sm:$0xff]   ;;  %v1467_v29 = vld [vmem:[%s1950_s0 + $0xe0] sm:$0xff]  }
   0xb   :  { %1372 = vmatprep.mubr.msk.bf16.mxu0 %vm315_vm0, %v1441_v4  ;;  %1404 = vmatprep.mubr.msk.bf16.mxu1 %vm315_vm0, %v1457_v9  ;;  %v1454_v30 = vld [vmem:[%s1950_s0 + $0x78] sm:$0xff]   ;;  %v1468_v31 = vld [vmem:[%s1950_s0 + $0xe8] sm:$0xff]   ;;  %v1469_v32 = vld [vmem:[%s1950_s0 + $0xf0] sm:$0xff]  }
   0xc   :  { %v1470_v33 = vld [vmem:[%s1950_s0 + $0xf8] sm:$0xff]   ;;  %v1172_v34 = vld [vmem:[%s1952_s3] sm:$0xff]   ;;  %v1299_v37 = vld [vmem:[%s1952_s3 + $0x8] sm:$0xff]  }
   0xd   :  { %v1637_v36 = vld [vmem:[%s1951_s2] ss:$0 sm:$0xff]  ;;  %v1173_v38 = vunpack.c.l.bf16 %v1172_v34  ;;  %v1177_v41 = vunpack.c.l.bf16 %v1299_v37  ;;  %v1178_v47 = vunpack.c.h.bf16 %v1299_v37  ;;  %v1174_v48 = vunpack.c.h.bf16 %v1172_v34  ;;  %v1300_v50 = vld [vmem:[%s1952_s3 + $0x10] sm:$0xff]   ;;  %v1301_v53 = vld [vmem:[%s1952_s3 + $0x18] sm:$0xff]  }
   0xe   :  { %v1181_v58 = vunpack.c.l.bf16 %v1300_v50  ;;  %v1185_v59 = vunpack.c.l.bf16 %v1301_v53  ;;  %v1186_v4 = vunpack.c.h.bf16 %v1301_v53  ;;  %v1305_v53 = vld [vmem:[%s1952_s3 + $0x38] sm:$0xff]  }
  0x12   :  { %1373 = vmatmul.mubr.msk.bf16.gmra.mxu0 %vm315_vm0, %v1442_v5  ;;  %1405 = vmatmul.mubr.msk.bf16.gmra.mxu1 %vm315_vm0, %v1458_v12  ;;  %v1182_v5 = vunpack.c.h.bf16 %v1300_v50 }
  0x13   :  { %1376 = vmatprep.mubr.msk.bf16.mxu0 %vm315_vm0, %v1443_v6  ;;  %1408 = vmatprep.mubr.msk.bf16.mxu1 %vm315_vm0, %v1459_v13  ;;  %v1302_v13 = vld [vmem:[%s1952_s3 + $0x20] sm:$0xff]  }
  0x1a   :  { %1377 = vmatmul.mubr.msk.bf16.gmra.mxu0 %vm315_vm0, %v1444_v10  ;;  %1409 = vmatmul.mubr.msk.bf16.gmra.mxu1 %vm315_vm0, %v1460_v16 }
  0x1b   :  { %1380 = vmatprep.mubr.msk.bf16.mxu0 %vm315_vm0, %v1445_v11  ;;  %1412 = vmatprep.mubr.msk.bf16.mxu1 %vm315_vm0, %v1461_v17 }
  0x22   :  { %1381 = vmatmul.mubr.msk.bf16.gmra.mxu0 %vm315_vm0, %v1446_v14  ;;  %1413 = vmatmul.mubr.msk.bf16.gmra.mxu1 %vm315_vm0, %v1462_v20 }
  0x23   :  { %1384 = vmatprep.mubr.msk.bf16.mxu0 %vm315_vm0, %v1447_v15  ;;  %1416 = vmatprep.mubr.msk.bf16.mxu1 %vm315_vm0, %v1463_v21 }
  0x2a   :  { %1385 = vmatmul.mubr.msk.bf16.gmra.mxu0 %vm315_vm0, %v1448_v18  ;;  %1417 = vmatmul.mubr.msk.bf16.gmra.mxu1 %vm315_vm0, %v1464_v24  ;;  %v1303_v18 = vld [vmem:[%s1952_s3 + $0x28] sm:$0xff]  }
  0x2b   :  { %1388 = vmatprep.mubr.msk.bf16.mxu0 %vm315_vm0, %v1449_v19  ;;  %1420 = vmatprep.mubr.msk.bf16.mxu1 %vm315_vm0, %v1465_v25  ;;  %v1189_v25 = vunpack.c.l.bf16 %v1302_v13 }
  0x32   :  { %1389 = vmatmul.mubr.msk.bf16.gmra.mxu0 %vm315_vm0, %v1450_v22  ;;  %1421 = vmatmul.mubr.msk.bf16.gmra.mxu1 %vm315_vm0, %v1466_v28 }
  0x33   :  { %1392 = vmatprep.mubr.msk.bf16.mxu0 %vm315_vm0, %v1451_v23  ;;  %1424 = vmatprep.mubr.msk.bf16.mxu1 %vm315_vm0, %v1467_v29  ;;  %v1193_v29 = vunpack.c.l.bf16 %v1303_v18 }
  0x3a   :  { %1393 = vmatmul.mubr.msk.bf16.gmra.mxu0 %vm315_vm0, %v1452_v26  ;;  %1425 = vmatmul.mubr.msk.bf16.gmra.mxu1 %vm315_vm0, %v1468_v31 }
  0x3b   :  { %1396 = vmatprep.mubr.msk.bf16.mxu0 %vm315_vm0, %v1453_v27  ;;  %1428 = vmatprep.mubr.msk.bf16.mxu1 %vm315_vm0, %v1469_v32 }
  0x42   :  { %1397 = vmatmul.mubr.msk.bf16.gmra.mxu0 %vm315_vm0, %v1454_v30  ;;  %1429 = vmatmul.mubr.msk.bf16.gmra.mxu1 %vm315_vm0, %v1470_v33 }
  0xca   :  { %v1370_v35 = vpop.f32.mrf.mxu0  ;;  %v1658_v1 = vpop.f32.mrf.mxu1 }
  0xcb   :  { %v455_v40 = vadd.f32 %v1370_v35, %v1637_v36 }
  0xcc   :  { %v446_v39 = vpop.f32.mrf.mxu0  ;;  %v1663_v10 = vpop.f32.mrf.mxu1 }
  0xcd   :  { %v447_v42 = vadd.f32 %v1637_v36, %v446_v39  ;;  %v831_v51 = vsub.f32 %v455_v40, %v1177_v41  ;;  %v1194_v39 = vunpack.c.h.bf16 %v1303_v18  ;;  %v1190_v40 = vunpack.c.h.bf16 %v1302_v13 }
  0xce   :  { %v1371_v43 = vpop.f32.mrf.mxu0  ;;  %v1673_v19 = vpop.f32.mrf.mxu1 }
  0xcf   :  { %v829_v45 = vsub.f32 %v447_v42, %v1173_v38  ;;  %v458_v46 = vadd.f32 %v1371_v43, %v1637_v36  ;;  %v895_v61 = vmul.f32 %v831_v51, %v831_v51 }
  0xd0   :  { %v449_v49 = vpop.f32.mrf.mxu0  ;;  %v1676_v26 = vpop.f32.mrf.mxu1 }
  0xd1   :  { %v450_v52 = vadd.f32 %v1637_v36, %v449_v49  ;;  %v893_v54 = vmul.f32 %v829_v45, %v829_v45  ;;  %v832_v56 = vsub.f32 %v458_v46, %v1178_v47  ;;  %v962_v14 = vsel %vm66_vm1, %v895_v61, 0.0  ;;  %v1304_v49 = vld [vmem:[%s1952_s3 + $0x30] sm:$0xff]  }
  0xd2   :  { %v1374_v55 = vpop.f32.mrf.mxu0  ;;  %v1681_v35 = vpop.f32.mrf.mxu1 }
  0xd3   :  { %v830_v57 = vsub.f32 %v450_v52, %v1174_v48  ;;  %v471_v63 = vadd.f32 %v1374_v55, %v1637_v36  ;;  %v959_v2 = vsel %vm66_vm1, %v893_v54, 0.0  ;;  %v896_v6 = vmul.f32 %v832_v56, %v832_v56 }
  0xd4   :  { %v462_v60 = vpop.f32.mrf.mxu0  ;;  %v1685_v45 = vpop.f32.mrf.mxu1 }
  0xd5   :  { %v894_v62 = vmul.f32 %v830_v57, %v830_v57  ;;  %v463_v0 = vadd.f32 %v1637_v36, %v462_v60  ;;  %v835_v15 = vsub.f32 %v471_v63, %v1185_v59  ;;  %v964_v22 = vsel %vm66_vm1, %v896_v6, 0.0 }
  0xd6   :  { %v1375_v3 = vpop.f32.mrf.mxu0  ;;  %v1695_v54 = vpop.f32.mrf.mxu1  ;;  %v1197_v60 = vunpack.c.l.bf16 %v1304_v49 }
  0xd7   :  { %v960_v7 = vsel %vm66_vm1, %v894_v62, 0.0  ;;  %v833_v8 = vsub.f32 %v463_v0, %v1181_v58  ;;  %v474_v9 = vadd.f32 %v1375_v3, %v1637_v36  ;;  %v899_v31 = vmul.f32 %v835_v15, %v835_v15 }
  0xd8   :  { %v961_v11 = vadd.f32 %v960_v7, %v959_v2  ;;  %v465_v12 = vpop.f32.mrf.mxu0  ;;  %v1698_v61 = vpop.f32.mrf.mxu1  ;;  %v1201_v0 = vunpack.c.l.bf16 %v1305_v53 }
  0xd9   :  { %v897_v16 = vmul.f32 %v833_v8, %v833_v8  ;;  %v466_v17 = vadd.f32 %v1637_v36, %v465_v12  ;;  %v836_v23 = vsub.f32 %v474_v9, %v1186_v4  ;;  %v970_v50 = vsel %vm66_vm1, %v899_v31, 0.0 }
  0xda   :  { %v963_v20 = vadd.f32 %v962_v14, %v961_v11  ;;  %v1378_v21 = vpop.f32.mrf.mxu0  ;;  %v1703_v7 = vpop.f32.mrf.mxu1  ;;  %v1202_v11 = vunpack.c.h.bf16 %v1305_v53  ;;  %v1198_v12 = vunpack.c.h.bf16 %v1304_v49 }
  0xdb   :  { %v834_v24 = vsub.f32 %v466_v17, %v1182_v5  ;;  %v487_v28 = vadd.f32 %v1378_v21, %v1637_v36  ;;  %v966_v32 = vsel %vm66_vm1, %v897_v16, 0.0  ;;  %v900_v41 = vmul.f32 %v836_v23, %v836_v23 }
  0xdc   :  { %v965_v27 = vadd.f32 %v964_v22, %v963_v20  ;;  %v478_v30 = vpop.f32.mrf.mxu0  ;;  %v1306_v20 = vld [vmem:[%s1952_s3 + $0x40] sm:$0xff]   ;;  %v1710_v21 = vpop.f32.mrf.mxu1 }
  0xdd   :  { %v898_v33 = vmul.f32 %v834_v24, %v834_v24  ;;  %v479_v34 = vadd.f32 %v1637_v36, %v478_v30  ;;  %v839_v47 = vsub.f32 %v487_v28, %v1193_v29  ;;  %v972_v57 = vsel %vm66_vm1, %v900_v41, 0.0 }
  0xde   :  { %v967_v37 = vadd.f32 %v966_v32, %v965_v27  ;;  %v1379_v38 = vpop.f32.mrf.mxu0  ;;  %v1307_v27 = vld [vmem:[%s1952_s3 + $0x48] sm:$0xff]   ;;  %v1206_v49 = vunpack.c.h.bf16 %v1306_v20 }
  0xdf   :  { %v968_v42 = vsel %vm66_vm1, %v898_v33, 0.0  ;;  %v837_v43 = vsub.f32 %v479_v34, %v1189_v25  ;;  %v490_v44 = vadd.f32 %v1379_v38, %v1637_v36  ;;  %v903_v62 = vmul.f32 %v839_v47, %v839_v47 }
  0xe0   :  { %v969_v46 = vadd.f32 %v968_v42, %v967_v37  ;;  %v481_v48 = vpop.f32.mrf.mxu0  ;;  %v1205_v33 = vunpack.c.l.bf16 %v1306_v20  ;;  %v1209_v38 = vunpack.c.l.bf16 %v1307_v27 }
  0xe1   :  { %v901_v51 = vmul.f32 %v837_v43, %v837_v43  ;;  %v482_v52 = vadd.f32 %v1637_v36, %v481_v48  ;;  %v840_v58 = vsub.f32 %v490_v44, %v1194_v39  ;;  %v978_v22 = vsel %vm66_vm1, %v903_v62, 0.0 }
  0xe2   :  { %v971_v55 = vadd.f32 %v970_v50, %v969_v46  ;;  %v1382_v56 = vpop.f32.mrf.mxu0  ;;  %v1210_v48 = vunpack.c.h.bf16 %v1307_v27 }
  0xe3   :  { %v838_v59 = vsub.f32 %v482_v52, %v1190_v40  ;;  %v974_v3 = vsel %vm66_vm1, %v901_v51, 0.0  ;;  %v503_v5 = vadd.f32 %v1382_v56, %v1637_v36  ;;  %v904_v13 = vmul.f32 %v840_v58, %v840_v58  ;;  %v1719_v40 = vpop.f32.mrf.mxu1  ;;  %v1308_v58 = vld [vmem:[%s1952_s3 + $0x50] sm:$0xff]  }
  0xe4   :  { %v973_v63 = vadd.f32 %v972_v57, %v971_v55  ;;  %v494_v2 = vpop.f32.mrf.mxu0 }
  0xe5   :  { %v902_v4 = vmul.f32 %v838_v59, %v838_v59  ;;  %v495_v6 = vadd.f32 %v1637_v36, %v494_v2  ;;  %v843_v23 = vsub.f32 %v503_v5, %v1201_v0  ;;  %v980_v30 = vsel %vm66_vm1, %v904_v13, 0.0  ;;  %v1728_v59 = vpop.f32.mrf.mxu1  ;;  %v1309_v0 = vld [vmem:[%s1952_s3 + $0x58] sm:$0xff]  }
  0xe6   :  { %v975_v8 = vadd.f32 %v974_v3, %v973_v63  ;;  %v1383_v9 = vpop.f32.mrf.mxu0 }
  0xe7   :  { %v976_v14 = vsel %vm66_vm1, %v902_v4, 0.0  ;;  %v841_v15 = vsub.f32 %v495_v6, %v1197_v60  ;;  %v506_v16 = vadd.f32 %v1383_v9, %v1637_v36  ;;  %v907_v41 = vmul.f32 %v843_v23, %v843_v23 }
  0xe8   :  { %v977_v17 = vadd.f32 %v976_v14, %v975_v8  ;;  %v497_v18 = vpop.f32.mrf.mxu0  ;;  %v1213_v8 = vunpack.c.l.bf16 %v1308_v58  ;;  %v1736_v14 = vpop.f32.mrf.mxu1  ;;  %v1218_v23 = vunpack.c.h.bf16 %v1309_v0 }
  0xe9   :  { %v905_v24 = vmul.f32 %v841_v15, %v841_v15  ;;  %v498_v25 = vadd.f32 %v1637_v36, %v497_v18  ;;  %v844_v31 = vsub.f32 %v506_v16, %v1202_v11  ;;  %v986_v60 = vsel %vm66_vm1, %v907_v41, 0.0  ;;  %v1311_v41 = vld [vmem:[%s1952_s3 + $0x68] sm:$0xff]  }
  0xea   :  { %v979_v28 = vadd.f32 %v978_v22, %v977_v17  ;;  %v1386_v29 = vpop.f32.mrf.mxu0 }
  0xeb   :  { %v842_v32 = vsub.f32 %v498_v25, %v1198_v12  ;;  %v519_v37 = vadd.f32 %v1386_v29, %v1637_v36  ;;  %v982_v42 = vsel %vm66_vm1, %v905_v24, 0.0  ;;  %v908_v50 = vmul.f32 %v844_v31, %v844_v31 }
  0xec   :  { %v981_v34 = vadd.f32 %v980_v30, %v979_v28  ;;  %v510_v39 = vpop.f32.mrf.mxu0  ;;  %v1217_v12 = vunpack.c.l.bf16 %v1309_v0  ;;  %v1214_v24 = vunpack.c.h.bf16 %v1308_v58 }
  0xed   :  { %v906_v43 = vmul.f32 %v842_v32, %v842_v32  ;;  %v511_v44 = vadd.f32 %v1637_v36, %v510_v39  ;;  %v847_v56 = vsub.f32 %v519_v37, %v1209_v38  ;;  %v988_v4 = vsel %vm66_vm1, %v908_v50, 0.0  ;;  %v1310_v32 = vld [vmem:[%s1952_s3 + $0x60] sm:$0xff]  }
  0xee   :  { %v983_v46 = vadd.f32 %v982_v42, %v981_v34  ;;  %v1387_v47 = vpop.f32.mrf.mxu0  ;;  %v1222_v0 = vunpack.c.h.bf16 %v1310_v32 }
  0xef   :  { %v984_v51 = vsel %vm66_vm1, %v906_v43, 0.0  ;;  %v845_v52 = vsub.f32 %v511_v44, %v1205_v33  ;;  %v522_v53 = vadd.f32 %v1387_v47, %v1637_v36  ;;  %v911_v9 = vmul.f32 %v847_v56, %v847_v56  ;;  %v1746_v33 = vpop.f32.mrf.mxu1 }
  0xf0   :  { %v985_v55 = vadd.f32 %v984_v51, %v983_v46  ;;  %v513_v57 = vpop.f32.mrf.mxu0  ;;  %v1225_v51 = vunpack.c.l.bf16 %v1311_v41 }
  0xf1   :  { %v909_v62 = vmul.f32 %v845_v52, %v845_v52  ;;  %v514_v63 = vadd.f32 %v1637_v36, %v513_v57  ;;  %v848_v5 = vsub.f32 %v522_v53, %v1210_v48  ;;  %v994_v34 = vsel %vm66_vm1, %v911_v9, 0.0  ;;  %v1755_v53 = vpop.f32.mrf.mxu1 }
  0xf2   :  { %v987_v2 = vadd.f32 %v986_v60, %v985_v55  ;;  %v1390_v3 = vpop.f32.mrf.mxu0  ;;  %v1221_v48 = vunpack.c.l.bf16 %v1310_v32 }
  0xf3   :  { %v846_v6 = vsub.f32 %v514_v63, %v1206_v49  ;;  %v990_v15 = vsel %vm66_vm1, %v909_v62, 0.0  ;;  %v535_v17 = vadd.f32 %v1390_v3, %v1637_v36  ;;  %v912_v25 = vmul.f32 %v848_v5, %v848_v5 }
  0xf4   :  { %v989_v11 = vadd.f32 %v988_v4, %v987_v2  ;;  %v526_v13 = vpop.f32.mrf.mxu0  ;;  %v1226_v63 = vunpack.c.h.bf16 %v1311_v41 }
  0xf5   :  { %v910_v16 = vmul.f32 %v846_v6, %v846_v6  ;;  %v527_v18 = vadd.f32 %v1637_v36, %v526_v13  ;;  %v851_v37 = vsub.f32 %v535_v17, %v1217_v12  ;;  %v996_v44 = vsel %vm66_vm1, %v912_v25, 0.0  ;;  %v1764_v12 = vpop.f32.mrf.mxu1  ;;  %v1313_v17 = vld [vmem:[%s1952_s3 + $0x78] sm:$0xff]  }
  0xf6   :  { %v991_v20 = vadd.f32 %v990_v15, %v989_v11  ;;  %v1391_v22 = vpop.f32.mrf.mxu0  ;;  %v1312_v11 = vld [vmem:[%s1952_s3 + $0x70] sm:$0xff]  }
  0xf7   :  { %v992_v27 = vsel %vm66_vm1, %v910_v16, 0.0  ;;  %v849_v28 = vsub.f32 %v527_v18, %v1213_v8  ;;  %v538_v29 = vadd.f32 %v1391_v22, %v1637_v36  ;;  %v915_v55 = vmul.f32 %v851_v37, %v851_v37 }
  0xf8   :  { %v993_v30 = vadd.f32 %v992_v27, %v991_v20  ;;  %v529_v31 = vpop.f32.mrf.mxu0  ;;  %v1229_v25 = vunpack.c.l.bf16 %v1312_v11 }
  0xf9   :  { %v913_v38 = vmul.f32 %v849_v28, %v849_v28  ;;  %v530_v39 = vadd.f32 %v1637_v36, %v529_v31  ;;  %v852_v46 = vsub.f32 %v538_v29, %v1218_v23  ;;  %v1002_v13 = vsel %vm66_vm1, %v915_v55, 0.0  ;;  %v1772_v31 = vpop.f32.mrf.mxu1 }
  0xfa   :  { %v995_v42 = vadd.f32 %v994_v34, %v993_v30  ;;  %v1394_v43 = vpop.f32.mrf.mxu0  ;;  %v1233_v29 = vunpack.c.l.bf16 %v1313_v17 }
  0xfb   :  { %v850_v47 = vsub.f32 %v530_v39, %v1214_v24  ;;  %v551_v50 = vadd.f32 %v1394_v43, %v1637_v36  ;;  %v998_v56 = vsel %vm66_vm1, %v913_v38, 0.0  ;;  %v916_v2 = vmul.f32 %v852_v46, %v852_v46  ;;  %v1314_v39 = vld [vmem:[%s1952_s3 + $0x80] sm:$0xff]  }
  0xfc   :  { %v997_v49 = vadd.f32 %v996_v44, %v995_v42  ;;  %v542_v52 = vpop.f32.mrf.mxu0  ;;  %v1234_v43 = vunpack.c.h.bf16 %v1313_v17  ;;  %v1230_v44 = vunpack.c.h.bf16 %v1312_v11 }
  0xfd   :  { %v914_v57 = vmul.f32 %v850_v47, %v850_v47  ;;  %v543_v58 = vadd.f32 %v1637_v36, %v542_v52  ;;  %v855_v8 = vsub.f32 %v551_v50, %v1225_v51  ;;  %v1004_v22 = vsel %vm66_vm1, %v916_v2, 0.0 }
  0xfe   :  { %v999_v60 = vadd.f32 %v998_v56, %v997_v49  ;;  %v1395_v62 = vpop.f32.mrf.mxu0  ;;  %v575_v51 = vadd.f32 %v1637_v36, %v1663_v10  ;;  %v1237_v52 = vunpack.c.l.bf16 %v1314_v39  ;;  %v1784_v56 = vpop.f32.mrf.mxu1  ;;  %v1238_v2 = vunpack.c.h.bf16 %v1314_v39 }
  0xff   :  { %v1000_v3 = vsel %vm66_vm1, %v914_v57, 0.0  ;;  %v853_v4 = vsub.f32 %v543_v58, %v1221_v48  ;;  %v554_v5 = vadd.f32 %v1395_v62, %v1637_v36  ;;  %v919_v27 = vmul.f32 %v855_v8, %v855_v8  ;;  %v1315_v62 = vld [vmem:[%s1952_s3 + $0x88] sm:$0xff]  }
 0x100   :  { %v1001_v6 = vadd.f32 %v1000_v3, %v999_v60  ;;  %v545_v9 = vpop.f32.mrf.mxu0  ;;  %v583_v8 = vadd.f32 %v1658_v1, %v1637_v36  ;;  %v1796_v11 = vpop.f32.mrf.mxu1  ;;  %v586_v1 = vadd.f32 %v1673_v19, %v1637_v36 }
 0x101   :  { %v917_v15 = vmul.f32 %v853_v4, %v853_v4  ;;  %v546_v16 = vadd.f32 %v1637_v36, %v545_v9  ;;  %v856_v23 = vsub.f32 %v554_v5, %v1226_v63  ;;  %v1010_v57 = vsel %vm66_vm1, %v919_v27, 0.0 }
 0x102   :  { %v1003_v18 = vadd.f32 %v1002_v13, %v1001_v6  ;;  %v1398_v20 = vpop.f32.mrf.mxu0  ;;  %v578_v5 = vadd.f32 %v1637_v36, %v1676_v26  ;;  %v1241_v9 = vunpack.c.l.bf16 %v1315_v62 }
 0x103   :  { %v854_v24 = vsub.f32 %v546_v16, %v1222_v0  ;;  %v1006_v32 = vsel %vm66_vm1, %v917_v15, 0.0  ;;  %v567_v37 = vadd.f32 %v1398_v20, %v1637_v36  ;;  %v920_v46 = vmul.f32 %v856_v23, %v856_v23 }
 0x104   :  { %v1005_v28 = vadd.f32 %v1004_v22, %v1003_v18  ;;  %v558_v30 = vpop.f32.mrf.mxu0  ;;  %v861_v16 = vsub.f32 %v575_v51, %v1237_v52  ;;  %v1316_v18 = vld [vmem:[%s1952_s3 + $0x90] sm:$0xff]   ;;  %v1242_v22 = vunpack.c.h.bf16 %v1315_v62  ;;  %v1318_v51 = vld [vmem:[%s1952_s3 + $0xa0] sm:$0xff]  }
 0x105   :  { %v918_v34 = vmul.f32 %v854_v24, %v854_v24  ;;  %v559_v38 = vadd.f32 %v1637_v36, %v558_v30  ;;  %v859_v58 = vsub.f32 %v567_v37, %v1233_v29  ;;  %v1012_v3 = vsel %vm66_vm1, %v920_v46, 0.0 }
 0x106   :  { %v1007_v41 = vadd.f32 %v1006_v32, %v1005_v28  ;;  %v1399_v42 = vpop.f32.mrf.mxu0  ;;  %v862_v24 = vsub.f32 %v578_v5, %v1238_v2  ;;  %v1245_v27 = vunpack.c.l.bf16 %v1316_v18  ;;  %v1805_v28 = vpop.f32.mrf.mxu1  ;;  %v863_v30 = vsub.f32 %v583_v8, %v1241_v9 }
 0x107   :  { %v1008_v47 = vsel %vm66_vm1, %v918_v34, 0.0  ;;  %v857_v48 = vsub.f32 %v559_v38, %v1229_v25  ;;  %v570_v49 = vadd.f32 %v1399_v42, %v1637_v36  ;;  %v923_v13 = vmul.f32 %v859_v58, %v859_v58  ;;  %v1317_v34 = vld [vmem:[%s1952_s3 + $0x98] sm:$0xff]  }
 0x108   :  { %v1009_v50 = vadd.f32 %v1008_v47, %v1007_v41  ;;  %v561_v55 = vpop.f32.mrf.mxu0  ;;  %v925_v32 = vmul.f32 %v861_v16, %v861_v16  ;;  %v591_v37 = vadd.f32 %v1637_v36, %v1685_v45  ;;  %v1246_v39 = vunpack.c.h.bf16 %v1316_v18  ;;  %v1816_v47 = vpop.f32.mrf.mxu1 }
 0x109   :  { %v921_v60 = vmul.f32 %v857_v48, %v857_v48  ;;  %v562_v63 = vadd.f32 %v1637_v36, %v561_v55  ;;  %v860_v4 = vsub.f32 %v570_v49, %v1234_v43  ;;  %v1018_v29 = vsel %vm66_vm1, %v923_v13, 0.0 }
 0x10a   :  { %v1011_v0 = vadd.f32 %v1010_v57, %v1009_v50  ;;  %v864_v41 = vsub.f32 %v586_v1, %v1242_v22  ;;  %v926_v42 = vmul.f32 %v862_v24, %v862_v24  ;;  %v594_v43 = vadd.f32 %v1637_v36, %v1698_v61 }
 0x10b   :  { %v858_v10 = vsub.f32 %v562_v63, %v1230_v44  ;;  %v1014_v15 = vsel %vm66_vm1, %v921_v60, 0.0  ;;  %v924_v23 = vmul.f32 %v860_v4, %v860_v4  ;;  %v1249_v46 = vunpack.c.l.bf16 %v1317_v34  ;;  %v1319_v4 = vld [vmem:[%s1952_s3 + $0xa8] sm:$0xff]  }
 0x10c   :  { %v1013_v6 = vadd.f32 %v1012_v3, %v1011_v0  ;;  %v927_v48 = vmul.f32 %v863_v30, %v863_v30  ;;  %v1022_v49 = vsel %vm66_vm1, %v925_v32, 0.0  ;;  %v599_v50 = vadd.f32 %v1681_v35, %v1637_v36  ;;  %v1827_v0 = vpop.f32.mrf.mxu1 }
 0x10d   :  { %v922_v17 = vmul.f32 %v858_v10, %v858_v10  ;;  %v1020_v19 = vsel %vm66_vm1, %v924_v23, 0.0  ;;  %v865_v45 = vsub.f32 %v591_v37, %v1245_v27  ;;  %v1250_v55 = vunpack.c.h.bf16 %v1317_v34  ;;  %v1320_v23 = vld [vmem:[%s1952_s3 + $0xb0] sm:$0xff]  }
 0x10e   :  { %v1015_v20 = vadd.f32 %v1014_v15, %v1013_v6  ;;  %v928_v57 = vmul.f32 %v864_v41, %v864_v41  ;;  %v1024_v61 = vsel %vm66_vm1, %v926_v42, 0.0  ;;  %v602_v58 = vadd.f32 %v1695_v54, %v1637_v36 }
 0x10f   :  { %v1016_v26 = vsel %vm66_vm1, %v922_v17, 0.0  ;;  %v866_v60 = vsub.f32 %v594_v43, %v1246_v39  ;;  %v1253_v63 = vunpack.c.l.bf16 %v1318_v51  ;;  %v1026_v35 = vsel %vm66_vm1, %v927_v48, 0.0  ;;  %v1838_v17 = vpop.f32.mrf.mxu1 }
 0x110   :  { %v1017_v25 = vadd.f32 %v1016_v26, %v1015_v20  ;;  %v867_v2 = vsub.f32 %v599_v50, %v1249_v46  ;;  %v929_v3 = vmul.f32 %v865_v45, %v865_v45  ;;  %v607_v10 = vadd.f32 %v1637_v36, %v1710_v21 }
 0x111   :  { %v1254_v6 = vunpack.c.h.bf16 %v1318_v51  ;;  %v1028_v54 = vsel %vm66_vm1, %v928_v57, 0.0  ;;  %v868_v8 = vsub.f32 %v602_v58, %v1250_v55  ;;  %v930_v9 = vmul.f32 %v866_v60, %v866_v60  ;;  %v1849_v32 = vpop.f32.mrf.mxu1 }
 0x112   :  { %v1019_v38 = vadd.f32 %v1018_v29, %v1017_v25  ;;  %v610_v13 = vadd.f32 %v1637_v36, %v1728_v59  ;;  %v1257_v16 = vunpack.c.l.bf16 %v1319_v4  ;;  %v931_v18 = vmul.f32 %v867_v2, %v867_v2 }
 0x113   :  { %v1030_v20 = vsel %vm66_vm1, %v929_v3, 0.0  ;;  %v615_v22 = vadd.f32 %v1703_v7, %v1637_v36  ;;  %v869_v21 = vsub.f32 %v607_v10, %v1253_v63  ;;  %v1258_v1 = vunpack.c.h.bf16 %v1319_v4  ;;  %v1323_v4 = vld [vmem:[%s1952_s3 + $0xc8] sm:$0xff]  }
 0x114   :  { %v1021_v44 = vadd.f32 %v1020_v19, %v1019_v38  ;;  %v932_v24 = vmul.f32 %v868_v8, %v868_v8  ;;  %v1032_v59 = vsel %vm66_vm1, %v930_v9, 0.0  ;;  %v618_v25 = vadd.f32 %v1719_v40, %v1637_v36  ;;  %v1321_v38 = vld [vmem:[%s1952_s3 + $0xb8] sm:$0xff]  }
 0x115   :  { %v870_v27 = vsub.f32 %v610_v13, %v1254_v6  ;;  %v1261_v30 = vunpack.c.l.bf16 %v1320_v23  ;;  %v1034_v7 = vsel %vm66_vm1, %v931_v18, 0.0  ;;  %v871_v34 = vsub.f32 %v615_v22, %v1257_v16 }
 0x116   :  { %v1023_v52 = vadd.f32 %v1022_v49, %v1021_v44  ;;  %v933_v37 = vmul.f32 %v869_v21, %v869_v21  ;;  %v623_v39 = vadd.f32 %v1637_v36, %v1746_v33  ;;  %v1262_v41 = vunpack.c.h.bf16 %v1320_v23  ;;  %v1860_v49 = vpop.f32.mrf.mxu1  ;;  %v1324_v21 = vld [vmem:[%s1952_s3 + $0xd0] sm:$0xff]  }
 0x117   :  { %v1036_v40 = vsel %vm66_vm1, %v932_v24, 0.0  ;;  %v872_v42 = vsub.f32 %v618_v25, %v1258_v1  ;;  %v934_v43 = vmul.f32 %v870_v27, %v870_v27  ;;  %v626_v44 = vadd.f32 %v1637_v36, %v1764_v12 }
 0x118   :  { %v1025_v62 = vadd.f32 %v1024_v61, %v1023_v52  ;;  %v1265_v48 = vunpack.c.l.bf16 %v1321_v38  ;;  %v935_v50 = vmul.f32 %v871_v34, %v871_v34  ;;  %v1038_v45 = vsel %vm66_vm1, %v933_v37, 0.0  ;;  %v1322_v52 = vld [vmem:[%s1952_s3 + $0xc0] sm:$0xff]   ;;  %v1325_v34 = vld [vmem:[%s1952_s3 + $0xd8] sm:$0xff]  }
 0x119   :  { %v631_v51 = vadd.f32 %v1736_v14, %v1637_v36  ;;  %v873_v33 = vsub.f32 %v623_v39, %v1261_v30  ;;  %v1266_v57 = vunpack.c.h.bf16 %v1321_v38  ;;  %v936_v61 = vmul.f32 %v872_v42, %v872_v42 }
 0x11a   :  { %v1027_v5 = vadd.f32 %v1026_v35, %v1025_v62  ;;  %v1040_v12 = vsel %vm66_vm1, %v934_v43, 0.0  ;;  %v634_v58 = vadd.f32 %v1755_v53, %v1637_v36  ;;  %v874_v60 = vsub.f32 %v626_v44, %v1262_v41  ;;  %v670_v35 = vpop.f32.mrf.mxu1 }
 0x11b   :  { %v1269_v63 = vunpack.c.l.bf16 %v1322_v52  ;;  %v1042_v2 = vsel %vm66_vm1, %v935_v50, 0.0  ;;  %v875_v14 = vsub.f32 %v631_v51, %v1265_v48  ;;  %v937_v3 = vmul.f32 %v873_v33, %v873_v33 }
 0x11c   :  { %v1029_v15 = vadd.f32 %v1028_v54, %v1027_v5  ;;  %v639_v10 = vadd.f32 %v1637_v36, %v1784_v56  ;;  %v1270_v6 = vunpack.c.h.bf16 %v1322_v52  ;;  %v1044_v54 = vsel %vm66_vm1, %v936_v61, 0.0  ;;  %v1880_v16 = vpop.f32.mrf.mxu1 }
 0x11d   :  { %v876_v53 = vsub.f32 %v634_v58, %v1266_v57  ;;  %v938_v8 = vmul.f32 %v874_v60, %v874_v60  ;;  %v642_v9 = vadd.f32 %v1637_v36, %v1805_v28  ;;  %v939_v18 = vmul.f32 %v875_v14, %v875_v14 }
 0x11e   :  { %v1031_v26 = vadd.f32 %v1030_v20, %v1029_v15  ;;  %v1273_v15 = vunpack.c.l.bf16 %v1323_v4  ;;  %v1046_v20 = vsel %vm66_vm1, %v937_v3, 0.0  ;;  %v647_v22 = vadd.f32 %v1772_v31, %v1637_v36 }
 0x11f   :  { %v877_v56 = vsub.f32 %v639_v10, %v1269_v63  ;;  %v940_v1 = vmul.f32 %v876_v53, %v876_v53  ;;  %v1048_v28 = vsel %vm66_vm1, %v938_v8, 0.0  ;;  %v650_v24 = vadd.f32 %v1796_v11, %v1637_v36  ;;  %v1327_v63 = vld [vmem:[%s1952_s3 + $0xe8] sm:$0xff]  }
 0x120   :  { %v1033_v29 = vadd.f32 %v1032_v59, %v1031_v26  ;;  %v1274_v26 = vunpack.c.h.bf16 %v1323_v4  ;;  %v878_v59 = vsub.f32 %v642_v9, %v1270_v6  ;;  %v1277_v27 = vunpack.c.l.bf16 %v1324_v21 }
 0x121   :  { %v1050_v30 = vsel %vm66_vm1, %v939_v18, 0.0  ;;  %v879_v31 = vsub.f32 %v647_v22, %v1273_v15  ;;  %v655_v37 = vadd.f32 %v1637_v36, %v1827_v0  ;;  %v1278_v39 = vunpack.c.h.bf16 %v1324_v21  ;;  %v1326_v0 = vld [vmem:[%s1952_s3 + $0xe0] sm:$0xff]  }
 0x122   :  { %v1035_v19 = vadd.f32 %v1034_v7, %v1033_v29  ;;  %v673_v29 = vpop.f32.mrf.mxu1  ;;  %v941_v7 = vmul.f32 %v877_v56, %v877_v56  ;;  %v880_v11 = vsub.f32 %v650_v24, %v1274_v26  ;;  %v942_v41 = vmul.f32 %v878_v59, %v878_v59 }
 0x123   :  { %v1281_v43 = vunpack.c.l.bf16 %v1325_v34  ;;  %v663_v50 = vadd.f32 %v1816_v47, %v1637_v36  ;;  %v1282_v33 = vunpack.c.h.bf16 %v1325_v34  ;;  %v1286_v3 = vunpack.c.h.bf16 %v1326_v0 }
 0x124   :  { %v1037_v46 = vadd.f32 %v1036_v40, %v1035_v19  ;;  %v1052_v19 = vsel %vm66_vm1, %v940_v1, 0.0  ;;  %v658_v40 = vadd.f32 %v1637_v36, %v1849_v32  ;;  %v1430_v44 = vpop.f32.mrf.mxu1  ;;  %v1054_v48 = vsel %vm66_vm1, %v941_v7, 0.0 }
 0x125   :  { %v944_v52 = vmul.f32 %v880_v11, %v880_v11  ;;  %v666_v32 = vadd.f32 %v1838_v17, %v1637_v36  ;;  %v883_v47 = vsub.f32 %v663_v50, %v1281_v43  ;;  %v682_v21 = vadd.f32 %v1880_v16, %v1637_v36 }
 0x126   :  { %v1039_v55 = vadd.f32 %v1038_v45, %v1037_v46  ;;  %v943_v46 = vmul.f32 %v879_v31, %v879_v31  ;;  %v881_v45 = vsub.f32 %v655_v37, %v1277_v27  ;;  %v882_v57 = vsub.f32 %v658_v40, %v1278_v39  ;;  %v686_v58 = vpop.f32.mrf.mxu1 }
 0x127   :  { %v1060_v4 = vsel %vm66_vm1, %v944_v52, 0.0  ;;  %v884_v10 = vsub.f32 %v666_v32, %v1282_v33  ;;  %v947_v8 = vmul.f32 %v883_v47, %v883_v47  ;;  %v687_v27 = vadd.f32 %v1637_v36, %v686_v58 }
 0x128   :  { %v1041_v62 = vadd.f32 %v1040_v12, %v1039_v55  ;;  %v1056_v55 = vsel %vm66_vm1, %v942_v41, 0.0  ;;  %v1285_v12 = vunpack.c.l.bf16 %v1326_v0  ;;  %v1058_v60 = vsel %vm66_vm1, %v943_v46, 0.0  ;;  %v1431_v53 = vpop.f32.mrf.mxu1 }
 0x129   :  { %v946_v17 = vmul.f32 %v882_v57, %v882_v57  ;;  %v948_v22 = vmul.f32 %v884_v10, %v884_v10  ;;  %v1066_v24 = vsel %vm66_vm1, %v947_v8, 0.0  ;;  %v695_v11 = vadd.f32 %v1430_v44, %v1637_v36 }
 0x12a   :  { %v1043_v5 = vadd.f32 %v1042_v2, %v1041_v62  ;;  %v945_v62 = vmul.f32 %v881_v45, %v881_v45  ;;  %v671_v2 = vadd.f32 %v1637_v36, %v670_v35  ;;  %v1328_v35 = vld [vmem:[%s1952_s3 + $0xf0] sm:$0xff]  }
 0x12b   :  { %v1064_v56 = vsel %vm66_vm1, %v946_v17, 0.0  ;;  %v1293_v1 = vunpack.c.l.bf16 %v1328_v35  ;;  %v1068_v31 = vsel %vm66_vm1, %v948_v22, 0.0 }
 0x12c   :  { %v1045_v13 = vadd.f32 %v1044_v54, %v1043_v5  ;;  %v674_v5 = vadd.f32 %v1637_v36, %v673_v29  ;;  %v1289_v54 = vunpack.c.l.bf16 %v1327_v63  ;;  %v1062_v9 = vsel %vm66_vm1, %v945_v62, 0.0 }
 0x12d   :  { %v885_v15 = vsub.f32 %v671_v2, %v1285_v12  ;;  %v889_v41 = vsub.f32 %v687_v27, %v1293_v1 }
 0x12e   :  { %v1047_v23 = vadd.f32 %v1046_v20, %v1045_v13  ;;  %v679_v13 = vadd.f32 %v1860_v49, %v1637_v36  ;;  %v1290_v20 = vunpack.c.h.bf16 %v1327_v63 }
 0x12f   :  { %v949_v59 = vmul.f32 %v885_v15, %v885_v15  ;;  %v953_v33 = vmul.f32 %v889_v41, %v889_v41 }
 0x130   :  { %v1049_v25 = vadd.f32 %v1048_v28, %v1047_v23  ;;  %v886_v23 = vsub.f32 %v674_v5, %v1286_v3  ;;  %v689_v28 = vpop.f32.mrf.mxu1  ;;  %v887_v49 = vsub.f32 %v679_v13, %v1289_v54  ;;  %v888_v7 = vsub.f32 %v682_v21, %v1290_v20 }
 0x131   :  { %v690_v34 = vadd.f32 %v1637_v36, %v689_v28  ;;  %v1078_v12 = vsel %vm66_vm1, %v953_v33, 0.0 }
 0x132   :  { %v1051_v38 = vadd.f32 %v1050_v30, %v1049_v25  ;;  %v1329_v25 = vld [vmem:[%s1952_s3 + $0xf8] sm:$0xff]   ;;  %v1294_v30 = vunpack.c.h.bf16 %v1328_v35  ;;  %v950_v16 = vmul.f32 %v886_v23, %v886_v23  ;;  %v951_v39 = vmul.f32 %v887_v49, %v887_v49 }
 0x133   :  { %v952_v43 = vmul.f32 %v888_v7, %v888_v7 }
 0x134   :  { %v1053_v42 = vadd.f32 %v1052_v19, %v1051_v38  ;;  %v1297_v38 = vunpack.c.l.bf16 %v1329_v25  ;;  %v1070_v19 = vsel %vm66_vm1, %v949_v59, 0.0  ;;  %v1072_v46 = vsel %vm66_vm1, %v950_v16, 0.0 }
 0x135   :  { %v890_v50 = vsub.f32 %v690_v34, %v1294_v30  ;;  %v1074_v0 = vsel %vm66_vm1, %v951_v39, 0.0 }
 0x136   :  { %v1055_v51 = vadd.f32 %v1054_v48, %v1053_v42  ;;  %v1298_v42 = vunpack.c.h.bf16 %v1329_v25  ;;  %v698_v48 = vadd.f32 %v1431_v53, %v1637_v36 }
 0x137   :  { %v954_v57 = vmul.f32 %v890_v50, %v890_v50 }
 0x138   :  { %v1057_v61 = vadd.f32 %v1056_v55, %v1055_v51  ;;  %v891_v51 = vsub.f32 %v695_v11, %v1297_v38  ;;  %v1076_v55 = vsel %vm66_vm1, %v952_v43, 0.0  ;;  %v892_v32 = vsub.f32 %v698_v48, %v1298_v42 }
 0x139   :  { %v1080_v47 = vsel %vm66_vm1, %v954_v57, 0.0 }
 0x13a   :  { %v1059_v14 = vadd.f32 %v1058_v60, %v1057_v61  ;;  %v955_v61 = vmul.f32 %v891_v51, %v891_v51  ;;  %v956_v60 = vmul.f32 %v892_v32, %v892_v32 }
 0x13c   :  { %v1061_v6 = vadd.f32 %v1060_v4, %v1059_v14  ;;  %v1082_v62 = vsel %vm66_vm1, %v955_v61, 0.0  ;;  %v1084_v2 = vsel %vm66_vm1, %v956_v60, 0.0  ;;  %v957_v14 = vld [vmem:[%s1953_s4] sm:$0xff] }
 0x13e   :  { %v1063_v18 = vadd.f32 %v1062_v9, %v1061_v6 }
 0x140   :  { %v1065_v26 = vadd.f32 %v1064_v56, %v1063_v18 }
 0x142   :  { %v1067_v29 = vadd.f32 %v1066_v24, %v1065_v26 }
 0x144   :  { %v1069_v37 = vadd.f32 %v1068_v31, %v1067_v29 }
 0x146   :  { %v1071_v40 = vadd.f32 %v1070_v19, %v1069_v37 }
 0x148   :  { %v1073_v45 = vadd.f32 %v1072_v46, %v1071_v40 }
 0x14a   :  { %v1075_v52 = vadd.f32 %v1074_v0, %v1073_v45 }
 0x14c   :  { %v1077_v44 = vadd.f32 %v1076_v55, %v1075_v52 }
 0x14e   :  { %v1079_v58 = vadd.f32 %v1078_v12, %v1077_v44 }
 0x150   :  { %v1081_v36 = vadd.f32 %v1080_v47, %v1079_v58 }
 0x152   :  { %v1083_v63 = vadd.f32 %v1082_v62, %v1081_v36 }
 0x154   :  { %v1085_v3 = vadd.f32 %v1084_v2, %v1083_v63 }
 0x156   :  { %v1086_v4 = vadd.f32 %v1085_v3, %v957_v14 }
 0x158   :  { %1087 = vst.msk [vmem:[%s1953_s4] sm:$0xff] %vm66_vm1, %v1086_v4 }

</bundles_post_ra>
